<compile_context>
chip_gen: v7x
topology: tpu7x:2x2x1
jax: 0.10.0
libtpu: 0.0.40
codegen_flags: <defaults>
</compile_context>

<pallas_src>
import functools

import numpy as np
import jax
import jax.numpy as jnp
from jax.experimental import pallas as pl
from jax.experimental.pallas import tpu as pltpu


# ---------------------------------------------------------------------------
# Weight construction (matches torchvision's _upsample_bilinear2d_aa / PIL).
# Only host-side numpy is cached (no device arrays held across backends).
# ---------------------------------------------------------------------------
@functools.lru_cache(maxsize=None)
def _aa_weight_np(in_size: int, out_size: int) -> np.ndarray:
    """(out_size, in_size) row-stochastic antialiased bilinear weights."""
    scale = in_size / out_size
    support = max(scale, 1.0)                 # bilinear filter support == 1.0
    invscale = 1.0 / scale if scale > 1.0 else 1.0
    w_mat = np.zeros((out_size, in_size), dtype=np.float64)
    for i in range(out_size):
        center = scale * (i + 0.5)
        xmin = max(int(center - support + 0.5), 0)
        xmax = min(int(center + support + 0.5), in_size)
        js = np.arange(xmin, xmax, dtype=np.float64)
        wv = np.maximum(0.0, 1.0 - np.abs((js - center + 0.5) * invscale))
        s = wv.sum()
        if s > 0.0:
            wv = wv / s
        w_mat[i, xmin:xmax] = wv
    return w_mat.astype(np.float32)


@functools.lru_cache(maxsize=None)
def _aa_weight_host(in_size: int, out_size: int, transposed: bool, bf16: bool):
    """Weight oriented (in, out) if transposed, dtype-prepared on the host."""
    w = _aa_weight_np(in_size, out_size).copy()            # (out, in), f32
    if bf16:
        # Pre-compensate so the bf16-rounded filter rows still sum to ~1
        # (removes the small uniform intensity bias of naive bf16 casting).
        wb = w.astype(jnp.bfloat16).astype(np.float32)
        s = np.maximum(wb.sum(axis=1, keepdims=True), 1e-6)
        w = w / s
    if transposed:
        w = np.ascontiguousarray(w.T)                       # (in, out)
    return w.astype(jnp.bfloat16) if bf16 else w


def _output_size(h: int, w: int, size: int):
    """torchvision semantics for int size: shorter edge -> size, keep aspect."""
    short, long = (w, h) if w <= h else (h, w)
    new_short, new_long = size, int(size * long / short)
    new_w, new_h = (new_short, new_long) if w <= h else (new_long, new_short)
    return new_h, new_w


def _chip_info():
    """(physical VMEM bytes, has-two-TensorCores) with safe fallbacks."""
    vmem_cap = 64 * 1024 * 1024
    try:
        vmem_cap = int(pltpu.get_tpu_info().vmem_capacity_bytes)
    except Exception:
        pass
    two_tc = False
    try:
        kind = jax.devices()[0].device_kind.lower()
        two_tc = ("v7" in kind) or ("7x" in kind)
    except Exception:
        two_tc = vmem_cap <= 64 * 1024 * 1024
    return vmem_cap, two_tc


def _pass_plan(rows: int, use_bf16: bool):
    """Pick (mode, dtype) for a contraction whose flattened rows dim is `rows`.

    "flat"    -> (P*rows, K) @ (K, C) single MXU matmul (rows must align with
                 the dtype's sublane packing so the merge is a free retile).
    "batched" -> per-plane batched matmul with a broadcast weight (rare).
    """
    if rows % 8 != 0:
        return "batched", (jnp.bfloat16 if use_bf16 else jnp.float32)
    if use_bf16 and rows % 16 != 0:
        return "flat", jnp.float32            # keep the merge relayout-free
    return "flat", (jnp.bfloat16 if use_bf16 else jnp.float32)


_SINGLE_BUFFER_WEIGHT_BYTES = 512 * 1024      # Buffered(1) only for big weights


# ---------------------------------------------------------------------------
# In-kernel contraction helpers (no per-plane weight broadcast on the fast path)
# ---------------------------------------------------------------------------
def _dot_acc(a2, w, acc):
    return jnp.dot(a2, w, preferred_element_type=acc)


def _bmm_acc(lhs, rhs, acc):
    return jnp.einsum('pij,pjk->pik', lhs, rhs, preferred_element_type=acc)


def _right_contract(a, w, mode, out_dtype):
    """out[p, r, c] = sum_k a[p, r, k] * w[k, c]    (w given as (K, C))."""
    p, r, k = a.shape
    acc = (out_dtype
           if jnp.dtype(out_dtype).itemsize >= jnp.dtype(a.dtype).itemsize
           else a.dtype)
    if mode == "flat":
        c = w.shape[1]
        res = _dot_acc(a.reshape(p * r, k), w, acc).reshape(p, r, c)
    else:
        wb = jnp.broadcast_to(w, (p, k, w.shape[1]))
        res = _bmm_acc(a, wb, acc)
    return res.astype(out_dtype)


def _mid_contract(a, w, mode, out_dtype):
    """out[p, c, r] = sum_k w * a[p, k, r].

    mode == "flat":    w is (K, C); one (P*R, K) @ (K, C) matmul with XLU swaps
                       of the two minor dims around it (overlaps with MXU).
    mode == "batched": w is (C, K); broadcast over planes (unaligned fallback).
    """
    p, k, r = a.shape
    acc = (out_dtype
           if jnp.dtype(out_dtype).itemsize >= jnp.dtype(a.dtype).itemsize
           else a.dtype)
    if mode == "flat":
        c = w.shape[1]
        at = jnp.swapaxes(a, 1, 2)                                   # (P, R, K)
        res = _dot_acc(at.reshape(p * r, k), w, acc).reshape(p, r, c)
        res = jnp.swapaxes(res, 1, 2)                                # (P, C, R)
    else:
        c = w.shape[0]
        wb = jnp.broadcast_to(w, (p, c, k))
        res = _bmm_acc(wb, a, acc)
    return res.astype(out_dtype)


def _resize_kernel(x_ref, w1_ref, w2_ref, o_ref, *, width_first, mode1, mode2,
                   dt1, dt2, round_kind):
    x = x_ref[...].astype(dt1)                    # (P, Hi, Wi)
    w1 = w1_ref[...]
    w2 = w2_ref[...]
    if width_first:
        t = _right_contract(x, w1, mode1, dt2)            # (P, Hi, Wo_tile)
        out = _mid_contract(t, w2, mode2, jnp.float32)    # (P, Ho, Wo_tile)
    else:
        t = _mid_contract(x, w1, mode1, dt2)              # (P, Ho_tile, Wi)
        out = _right_contract(t, w2, mode2, jnp.float32)  # (P, Ho_tile, Wo)

    if round_kind == "unsigned":                  # round half up (torchvision)
        info = jnp.iinfo(o_ref.dtype)
        out = jnp.clip(jnp.floor(out + 0.5), info.min, info.max)
    elif round_kind == "signed":                  # round half away from zero
        info = jnp.iinfo(o_ref.dtype)
        out = jnp.where(out >= 0.0, jnp.floor(out + 0.5), jnp.ceil(out - 0.5))
        out = jnp.clip(out, info.min, info.max)
    o_ref[...] = out.astype(o_ref.dtype)


# ---------------------------------------------------------------------------
# Wrapper
# ---------------------------------------------------------------------------
def resize(x: jax.Array, size: int = 256, *, use_bf16: bool = True) -> jax.Array:
    """Bilinear antialiased resize of an NCHW tensor (torchvision semantics)."""
    n, c, h, w = x.shape
    new_h, new_w = _output_size(h, w, size)
    if (new_h, new_w) == (h, w):
        return x                                  # torchvision: unchanged

    planes = n * c
    out_dtype = x.dtype

    # Contraction order: minimize MXU MACs.
    width_first = h * new_w * (w + new_h) <= new_h * w * (h + new_w)
    if width_first:
        R1, K1, C1 = h, w, new_w                  # pass1 contracts W
        K2, C2 = h, new_h                         # pass2 contracts H
    else:
        R1, K1, C1 = w, h, new_h                  # pass1 contracts H
        K2, C2 = w, new_w                         # pass2 contracts W

    mode1, dt1 = _pass_plan(R1, use_bf16)

    # ---- VMEM budgeting ------------------------------------------------------
    vmem_cap, two_tc = _chip_info()
    if vmem_cap >= 100 * 1024 * 1024:             # 128 MiB parts (v5e / v6e)
        vmem_limit = int(min(vmem_cap - 24 * 1024 * 1024, 112 * 1024 * 1024))
    else:                                         # v7x-style 64 MiB per core
        vmem_limit = int(max((vmem_cap * 3) // 4, 32 * 1024 * 1024))
    budget = vmem_limit - 2 * 1024 * 1024         # single fixed compiler slack

    in_it = jnp.dtype(x.dtype).itemsize
    out_it = jnp.dtype(out_dtype).itemsize
    dt1_it = jnp.dtype(dt1).itemsize

    def block_bytes(p, t_sz, m2, d2):
        d2_it = jnp.dtype(d2).itemsize
        mx_it = max(dt1_it, d2_it)
        b = 2 * p * h * w * in_it                 # input block (double-buffered)
        b += p * h * w * dt1_it                   # compute-dtype copy of input
        if (not width_first) and mode1 == "flat":
            b += p * h * w * dt1_it               # transposed input copy (H pass)
        b += 2 * p * R1 * t_sz * mx_it            # pass1 result (+ swap copy)
        b += 2 * p * t_sz * C2 * 4                # f32 pass2 result (+ swap copy)
        b += 2 * p * t_sz * C2 * out_it           # output block (double-buffered)
        if mode1 == "batched":
            b += p * K1 * t_sz * dt1_it           # per-plane broadcast of w1
        if m2 == "batched":
            b += p * K2 * C2 * d2_it              # per-plane broadcast of w2
        b += 2 * K1 * t_sz * dt1_it               # w1 block(s)
        b += 2 * K2 * C2 * d2_it                  # w2 block(s)
        return b

    # Spatial tile over the non-contracted output axis of pass1 (C1).  Only
    # shrunk when a single plane would overflow VMEM (large frames; most
    # relevant on v7x).  The input block stays resident across these tiles.
    tile = C1
    m2, d2 = _pass_plan(tile, use_bf16)
    if block_bytes(1, tile, m2, d2) > budget and C1 > 128:
        t_cand = max(128, (C1 // 2) // 128 * 128)
        m2, d2 = _pass_plan(t_cand, use_bf16)
        while t_cand > 128 and block_bytes(1, t_cand, m2, d2) > budget:
            t_cand = max(128, (t_cand // 2) // 128 * 128)
            m2, d2 = _pass_plan(t_cand, use_bf16)
        tile = t_cand
    mode2, dt2 = _pass_plan(tile, use_bf16)
    n_tiles = int(pl.cdiv(C1, tile))
    dt2_it = jnp.dtype(dt2).itemsize

    # Planes per grid step.
    fixed = block_bytes(0, tile, mode2, dt2)
    per_plane = max(block_bytes(1, tile, mode2, dt2) - fixed, 1)
    p_block = int(max(1, min(planes, (budget - fixed) // per_plane)))
    if two_tc and planes >= 2:
        # Keep >= 2 "parallel" steps only where there are two TensorCores.
        p_block = min(p_block, int(pl.cdiv(planes, 2)))
    p_block = max(1, int(p_block))
    n_pb = int(pl.cdiv(planes, p_block))

    # ---- Weights (width weight always right-multiplies; height weight is
    # transposed only for the flat path) --------------------------------------
    bf1 = jnp.dtype(dt1) == jnp.dtype(jnp.bfloat16)
    bf2 = jnp.dtype(dt2) == jnp.dtype(jnp.bfloat16)
    h_mode = mode2 if width_first else mode1
    h_bf16 = bf2 if width_first else bf1
    w_bf16 = bf1 if width_first else bf2
    w_w = jnp.asarray(_aa_weight_host(w, new_w, True, w_bf16))            # (Wi, Wo)
    w_h = jnp.asarray(_aa_weight_host(h, new_h, h_mode == "flat", h_bf16))
    w1, w2 = (w_w, w_h) if width_first else (w_h, w_w)

    # Single-buffer constant weight inputs above a size threshold.
    w1_kw = {}
    if n_tiles == 1 and w1.size * dt1_it >= _SINGLE_BUFFER_WEIGHT_BYTES:
        w1_kw = dict(pipeline_mode=pl.Buffered(1))
    w2_kw = {}
    if w2.size * dt2_it >= _SINGLE_BUFFER_WEIGHT_BYTES:
        w2_kw = dict(pipeline_mode=pl.Buffered(1))

    # ---- Block specs ---------------------------------------------------------
    x_spec = pl.BlockSpec((p_block, h, w), lambda b, t: (b, 0, 0))
    if width_first or mode1 == "flat":            # w1 is (K1, C1), tiled on C1
        w1_spec = pl.BlockSpec((K1, tile), lambda b, t: (0, t), **w1_kw)
    else:                                         # w1 is (C1, K1), tiled on C1
        w1_spec = pl.BlockSpec((tile, K1), lambda b, t: (t, 0), **w1_kw)
    w2_spec = pl.BlockSpec(tuple(w2.shape), lambda b, t: (0, 0), **w2_kw)
    if width_first:
        out_spec = pl.BlockSpec((p_block, new_h, tile), lambda b, t: (b, 0, t))
    else:
        out_spec = pl.BlockSpec((p_block, tile, new_w), lambda b, t: (b, t, 0))

    if jnp.issubdtype(out_dtype, jnp.integer):
        round_kind = ("unsigned" if jnp.issubdtype(out_dtype, jnp.unsignedinteger)
                      else "signed")
    else:
        round_kind = "none"

    kernel = functools.partial(
        _resize_kernel, width_first=width_first, mode1=mode1, mode2=mode2,
        dt1=dt1, dt2=dt2, round_kind=round_kind)

    out_planes = pl.pallas_call(
        kernel,
        out_shape=jax.ShapeDtypeStruct((planes, new_h, new_w), out_dtype),
        grid=(n_pb, n_tiles),
        in_specs=[x_spec, w1_spec, w2_spec],
        out_specs=out_spec,
        compiler_params=pltpu.CompilerParams(
            dimension_semantics=("parallel", "arbitrary"),
            vmem_limit_bytes=int(vmem_limit)),
    )(x.reshape(planes, h, w), w1, w2)

    return out_planes.reshape(n, c, new_h, new_w)


class Resize:
    """JAX/Pallas counterpart of the PyTorch Resize module."""

    def __init__(self, size: int = 256, use_bf16: bool = True):
        self.size = size
        self.use_bf16 = use_bf16

    def __call__(self, x: jax.Array) -> jax.Array:
        return resize(x, self.size, use_bf16=self.use_bf16)


if __name__ == "__main__":
    key = jax.random.PRNGKey(0)
    # Small shapes: batch=2, channels=4, spatial 16x16, resize shorter edge -> 8.
    x = jax.random.uniform(key, (2, 4, 16, 16), dtype=jnp.float32)

    model = Resize(size=8)                    # default: bf16 operands, f32 accumulate
    y = jax.block_until_ready(model(x))
    assert y.shape == (2, 4, 8, 8), y.shape
    assert y.dtype == x.dtype, y.dtype

    # Exact reference in numpy float64 with the same separable weights.
    wh_np = _aa_weight_np(16, 8).astype(np.float64)
    ww_np = _aa_weight_np(16, 8).astype(np.float64)
    ref = np.einsum("oh,nchw,pw->ncop", wh_np, np.asarray(x, np.float64), ww_np)

    # bf16-operand path: tolerance sized for bf16 operand/weight rounding.
    np.testing.assert_allclose(np.asarray(y, np.float64), ref, rtol=2e-2, atol=2e-2)

    # f32 path: tolerance covers possible bf16 MXU passes at default precision.
    y32 = jax.block_until_ready(resize(x, 8, use_bf16=False))
    np.testing.assert_allclose(np.asarray(y32, np.float64), ref, rtol=1e-2, atol=1e-2)

    print("KERNEL_OK")
</pallas_src>

<mosaic_0001>
module attributes {stable_mosaic.version = 11 : i64} {
  func.func @_resize_kernel(%arg0: i32, %arg1: i32, %arg2: memref<8x16x16xf32, #tpu.memory_space<vmem>>, %arg3: memref<16x8xbf16, #tpu.memory_space<vmem>>, %arg4: memref<16x8xf32, #tpu.memory_space<vmem>>, %arg5: memref<8x8x8xf32, #tpu.memory_space<vmem>>) attributes {dimension_semantics = [#tpu.dimension_semantics<parallel>, #tpu.dimension_semantics<arbitrary>], iteration_bounds = array<i64: 1, 1>, scalar_prefetch = 0 : i64, scratch_operands = 0 : i64, tpu.core_type = #tpu.core_type<tc>, window_params = [{transform_indices = @transform_0, window_bounds = array<i64: 8, 16, 16>}, {transform_indices = @transform_1, window_bounds = array<i64: 16, 8>}, {pipeline_mode = #tpu.pipeline_mode<synchronous>, transform_indices = @transform_2, window_bounds = array<i64: 16, 8>}, {transform_indices = @transform_3, window_bounds = array<i64: 8, 8, 8>}]} {
    %c0 = arith.constant 0 : index
    %c0_0 = arith.constant 0 : index
    %c0_1 = arith.constant 0 : index
    %0 = vector.load %arg2[%c0, %c0_0, %c0_1] : memref<8x16x16xf32, #tpu.memory_space<vmem>>, vector<8x16x16xf32>
    %1 = arith.truncf %0 : vector<8x16x16xf32> to vector<8x16x16xbf16>
    %c0_2 = arith.constant 0 : index
    %c0_3 = arith.constant 0 : index
    %2 = vector.load %arg3[%c0_2, %c0_3] : memref<16x8xbf16, #tpu.memory_space<vmem>>, vector<16x8xbf16>
    %c0_4 = arith.constant 0 : index
    %c0_5 = arith.constant 0 : index
    %3 = vector.load %arg4[%c0_4, %c0_5] : memref<16x8xf32, #tpu.memory_space<vmem>>, vector<16x8xf32>
    %4 = vector.shape_cast %1 : vector<8x16x16xbf16> to vector<128x16xbf16>
    %cst = arith.constant dense<0.000000e+00> : vector<128x8xf32>
    %5 = tpu.matmul %4, %2, %cst {dimension_numbers = #tpu.dot_dimension_numbers<[1], [0], [0], [1], [0, 0, 1, 1], [], []>} : vector<128x16xbf16>, vector<16x8xbf16>, vector<128x8xf32> -> vector<128x8xf32>
    %6 = vector.shape_cast %5 : vector<128x8xf32> to vector<8x16x8xf32>
    %7 = tpu.transpose %6, [0, 2, 1] : vector<8x16x8xf32> -> vector<8x8x16xf32>
    %8 = vector.shape_cast %7 : vector<8x8x16xf32> to vector<64x16xf32>
    %cst_6 = arith.constant dense<0.000000e+00> : vector<64x8xf32>
    %9 = tpu.matmul %8, %3, %cst_6 {dimension_numbers = #tpu.dot_dimension_numbers<[1], [0], [0], [1], [0, 0, 1, 1], [], []>} : vector<64x16xf32>, vector<16x8xf32>, vector<64x8xf32> -> vector<64x8xf32>
    %10 = vector.shape_cast %9 : vector<64x8xf32> to vector<8x8x8xf32>
    %11 = tpu.transpose %10, [0, 2, 1] : vector<8x8x8xf32> -> vector<8x8x8xf32>
    %c0_7 = arith.constant 0 : index
    %c0_8 = arith.constant 0 : index
    %c0_9 = arith.constant 0 : index
    %12 = vector.load %arg5[%c0_7, %c0_8, %c0_9] : memref<8x8x8xf32, #tpu.memory_space<vmem>>, vector<8x8x8xf32>
    tpu.vector_store %arg5[%c0_7, %c0_8, %c0_9], %11 {strides = array<i32>} : memref<8x8x8xf32, #tpu.memory_space<vmem>>, vector<8x8x8xf32>,
    return
  }
  func.func @transform_0(%arg0: i32, %arg1: i32) -> (i32, i32, i32) {
    %c0_i32 = arith.constant 0 : i32
    %c0_i32_0 = arith.constant 0 : i32
    %c0_i32_1 = arith.constant 0 : i32
    return %arg0, %c0_i32, %c0_i32_0 : i32, i32, i32
  }
  func.func @transform_1(%arg0: i32, %arg1: i32) -> (i32, i32) {
    %c0_i32 = arith.constant 0 : i32
    %c0_i32_0 = arith.constant 0 : i32
    return %c0_i32, %arg1 : i32, i32
  }
  func.func @transform_2(%arg0: i32, %arg1: i32) -> (i32, i32) {
    %c0_i32 = arith.constant 0 : i32
    %c0_i32_0 = arith.constant 0 : i32
    %c0_i32_1 = arith.constant 0 : i32
    return %c0_i32, %c0_i32_0 : i32, i32
  }
  func.func @transform_3(%arg0: i32, %arg1: i32) -> (i32, i32, i32) {
    %c0_i32 = arith.constant 0 : i32
    %c0_i32_0 = arith.constant 0 : i32
    return %arg0, %c0_i32, %arg1 : i32, i32, i32
  }
}

</mosaic_0001>

<bundles_post_ra>
// kernel: tpu_custom_call.1
= control target key start
LH: loop header
LB: loop body
LE: loop exit
PB: predicated region body
PF: predicated region fallthrough
CT: control target
= control target key end

     0   :  { %8 = vsyncpa [#allocation3], 0  ;;  %s1070_s0 = inlined_call_operand.hbm [shape: f32[8,16,16], index: 0, kind: input, shape index: {}]   ;;  %s1071_s1 = inlined_call_operand.vmem [shape: bf16[16,8], index: 1, kind: input, shape index: {}]   ;;  %s1072_s2 = inlined_call_operand.vmem [shape: f32[16,8], index: 2, kind: input, shape index: {}]   ;;  %s1073_s3 = inlined_call_operand.hbm [shape: f32[8,8,8], index: 3, kind: output, shape index: {}]  }
   0x1   :  { %9 = vsyncpa [#allocation4], 0  ;;  %s983_s12 = smov [#allocation2]   ;;  %s935_s16 = scalar_lea.hbm %s1070_s0, 2048 }
   0x2   :  { %s15_s13 = sshll.u32 %s983_s12, 4  ;;  %p936_p0 = scmp.ne.s32.totalorder %s1070_s0, %s935_s16  ;;  %s16_s13 = int_to_ptr.vmem [resolvable:$true] %s15_s13 }
   0x3   :  { %p939_p1 = scmp.lt.u32.totalorder %s935_s16, %s1070_s0 }
   0x5   :  { %p941_p2 = pnand %p939_p1, %p936_p0 }
   0x7   :  { %944 = shalt.err (!%p941_p2)
}
   0x8   :  { %s945_s21 = scalar_lea.vmem %s16_s13, 2048  ;;  %p950_p4 = scmp.lt.s32.totalorder %s16_s13, %s16_s13 }
   0x9   :  { %p946_p3 = scmp.ne.s32.totalorder %s16_s13, %s945_s21  ;;  %p951_p5 = scmp.lt.s32.totalorder %s945_s21, %s945_s21 }
   0xb   :  { %p952_p6 = por %p951_p5, %p950_p4 }
   0xd   :  { %p953_p7 = pnand %p952_p6, %p946_p3 }
   0xf   :  { %956 = shalt.err (!%p953_p7)
}
  0x10   :  { %s984_s22 = smov 128   ;;  %s985_s23 = smov 8  }
  0x11   :  { %21 = dma.hbm_to_vmem [thread:$0]  %s1070_s0, 2048, %s16_s13, [#allocation3], %s984_s22, %s984_s22, %s985_s23  }
  0x12   :  { %979 = dma.done.wait [#allocation3], 2048  }
  0x13   :  { %980 = vsyncadd [#allocation3], 4294965248  ;;  %v934_v0 = vld [vmem:[%s1071_s1] sm:$0xff]   ;;  %v31_v2 = vld [vmem:[#allocation2 + $0x8] sm:$0xff]  ;;  %vm64_vm0 = vcmask 130048   ;;  %vm827_vm1 = vcmask 64512  }
  0x14   :  { %v30_v1 = vld [vmem:[#allocation2] sm:$0xff]  ;;  %v32_v3 = vld [vmem:[#allocation2 + $0x10] sm:$0xff]  ;;  %889 = vmatprep.subr.bf16.mxu0 %v934_v0  ;;  %v33_v5 = vld [vmem:[#allocation2 + $0x18] sm:$0xff]  ;;  %927 = vmatprep.subr.bf16.mxu1 %v934_v0 }
  0x15   :  { %v46_v4 = vpack.c.bf16 %v31_v2, %v30_v1  ;;  %v34_v6 = vld [vmem:[#allocation2 + $0x20] sm:$0xff]  ;;  %v35_v7 = vld [vmem:[#allocation2 + $0x28] sm:$0xff]  ;;  %890 = vmatpush3.bf16.msra.mxu0 %v934_v0  ;;  %v47_v8 = vpack.c.bf16 %v33_v5, %v32_v3  ;;  %928 = vmatpush3.bf16.msra.mxu1 %v934_v0  ;;  %v44_v12 = vld [vmem:[#allocation2 + $0x70] sm:$0xff] }
  0x16   :  { %v48_v9 = vpack.c.bf16 %v35_v7, %v34_v6  ;;  %v42_v10 = vld [vmem:[#allocation2 + $0x60] sm:$0xff]  ;;  %v43_v11 = vld [vmem:[#allocation2 + $0x68] sm:$0xff]  ;;  %v45_v14 = vld [vmem:[#allocation2 + $0x78] sm:$0xff] }
  0x17   :  { %891 = vmatprep.mubr.msk.bf16.mxu0 %vm64_vm0, %v46_v4  ;;  %v52_v13 = vpack.c.bf16 %v43_v11, %v42_v10  ;;  %v36_v15 = vld [vmem:[#allocation2 + $0x30] sm:$0xff]  ;;  %v37_v16 = vld [vmem:[#allocation2 + $0x38] sm:$0xff]  ;;  %v53_v17 = vpack.c.bf16 %v45_v14, %v44_v12  ;;  %v38_v18 = vld [vmem:[#allocation2 + $0x40] sm:$0xff] }
  0x18   :  { %892 = vmatmul.mubr.msk.bf16.vlgmr.msra.gmra.mrb[0].mxu0 %vm64_vm0, %v47_v8  ;;  %v39_v19 = vld [vmem:[#allocation2 + $0x48] sm:$0xff]  ;;  %v49_v20 = vpack.c.bf16 %v37_v16, %v36_v15  ;;  %v40_v22 = vld [vmem:[#allocation2 + $0x50] sm:$0xff]  ;;  %v41_v23 = vld [vmem:[#allocation2 + $0x58] sm:$0xff] }
  0x19   :  { %895 = vmatprep.mubr.msk.bf16.mxu0 %vm64_vm0, %v48_v9  ;;  %903 = vmatprep.mubr.msk.bf16.mxu1 %vm64_vm0, %v52_v13  ;;  %v50_v21 = vpack.c.bf16 %v39_v19, %v38_v18  ;;  %v51_v24 = vpack.c.bf16 %v41_v23, %v40_v22  ;;  %v56_v25 = vld [vmem:[%s1072_s2] sm:$0xff]  ;;  %v57_v26 = vld [vmem:[%s1072_s2 + $0x8] sm:$0xff]  ;;  %s986_s2 = smov [#allocation5]  }
  0x1a   :  { %904 = vmatmul.mubr.msk.bf16.vlgmr.msra.gmra.mrb[0].mxu1 %vm64_vm0, %v53_v17  ;;  %v923_v27 = vpack.c.bf16 %v57_v26, %v56_v25  ;;  %s841_s30 = sshll.u32 %s986_s2, 4  ;;  %s842_s30 = int_to_ptr.vmem [resolvable:$true] %s841_s30 }
  0x1b   :  { %s957_s4 = scalar_lea.vmem %s842_s30, 1024  ;;  %p962_p9 = scmp.lt.s32.totalorder %s842_s30, %s842_s30 }
  0x1c   :  { %924 = vmatprep.subr.bf16.mxu1 %v923_v27  ;;  %p958_p8 = scmp.ne.s32.totalorder %s842_s30, %s957_s4  ;;  %p963_p10 = scmp.lt.s32.totalorder %s957_s4, %s957_s4 }
  0x1d   :  { %926 = vmatpush3.bf16.msra.mxu1 %v923_v27 }
  0x1e   :  { %p964_p11 = por %p963_p10, %p962_p9 }
  0x20   :  { %896 = vmatmul.mubr.msk.bf16.gmra.mrb[4].mxu0 %vm64_vm0, %v49_v20  ;;  %p965_p12 = pnand %p964_p11, %p958_p8 }
  0x21   :  { %899 = vmatprep.mubr.msk.bf16.mxu0 %vm64_vm0, %v50_v21 }
  0x28   :  { %900 = vmatmul.mubr.msk.bf16.gmra.mrb[8].mxu0 %vm64_vm0, %v51_v24 }
  0xeb   :  { %v893_v28 = vpop.f32.mrb[0].mxu0 }
  0xec   :  { %218 = vxpose.xlu1.b32.start [1/2] (short) (narrow) %v893_v28, 8  ;;  %v123_v29 = vpop.f32.mrb[1].mxu0 }
  0xed   :  { %186 = vxpose.xlu0.b32.start [1/2] (short) (narrow) %v123_v29, 8  ;;  %v894_v30 = vpop.f32.mrb[2].mxu0  ;;  %v905_v32 = vpop.f32.mrb[0].mxu1 }
  0xee   :  { %v126_v31 = vpop.f32.mrb[3].mxu0  ;;  %v171_v33 = vpop.f32.mrb[1].mxu1 }
  0xef   :  { %v906_v34 = vpop.f32.mrb[2].mxu1 }
  0xf0   :  { %219 = vxpose.xlu1.b32.end [2/2] (short) (narrow) %v894_v30, 8  ;;  %v174_v35 = vpop.f32.mrb[3].mxu1 }
  0xf1   :  { %187 = vxpose.xlu0.b32.end [2/2] (short) (narrow) %v126_v31, 8 }
  0xf3   :  { %v897_v36 = vpop.f32.mrb[4].mxu0 }
  0xf4   :  { %282 = vxpose.xlu1.b32.start [1/2] (short) (narrow) %v897_v36, 8  ;;  %v139_v37 = vpop.f32.mrb[5].mxu0 }
  0xf5   :  { %250 = vxpose.xlu0.b32.start [1/2] (short) (narrow) %v139_v37, 8  ;;  %v898_v38 = vpop.f32.mrb[6].mxu0 }
  0xf6   :  { %v142_v39 = vpop.f32.mrb[7].mxu0 }
  0xf8   :  { %283 = vxpose.xlu1.b32.end [2/2] (short) (narrow) %v898_v38, 8 }
  0xf9   :  { %251 = vxpose.xlu0.b32.end [2/2] (short) (narrow) %v142_v39, 8 }
  0xfb   :  { %v901_v40 = vpop.f32.mrb[8].mxu0 }
  0xfc   :  { %346 = vxpose.xlu1.b32.start [1/2] (short) (narrow) %v901_v40, 8  ;;  %v155_v41 = vpop.f32.mrb[9].mxu0 }
  0xfd   :  { %314 = vxpose.xlu0.b32.start [1/2] (short) (narrow) %v155_v41, 8  ;;  %v902_v42 = vpop.f32.mrb[10].mxu0 }
  0xfe   :  { %v158_v43 = vpop.f32.mrb[11].mxu0 }
 0x100   :  { %347 = vxpose.xlu1.b32.end [2/2] (short) (narrow) %v902_v42, 8 }
 0x101   :  { %315 = vxpose.xlu0.b32.end [2/2] (short) (narrow) %v158_v43, 8 }
 0x104   :  { %410 = vxpose.xlu1.b32.start [1/2] (short) (narrow) %v905_v32, 8 }
 0x105   :  { %378 = vxpose.xlu0.b32.start [1/2] (short) (narrow) %v171_v33, 8 }
 0x108   :  { %411 = vxpose.xlu1.b32.end [2/2] (short) (narrow) %v906_v34, 8 }
 0x109   :  { %379 = vxpose.xlu0.b32.end [2/2] (short) (narrow) %v174_v35, 8 }
 0x16c   :  { %v234_v44 = vpop.trf.xlu1 }
 0x16d   :  { %v202_v45 = vpop.trf.xlu0 }
 0x16e   :  { %911 = vmatprep.mubr.msk.f32.mxu1 %vm64_vm0, %v202_v45 }
 0x16f   :  { %912 = vmatmul.mubr.msk.f32.vlgmr.msra.gmra.mrb[4].mxu1 %vm64_vm0, %v234_v44 }
 0x174   :  { %v298_v46 = vpop.trf.xlu1 }
 0x175   :  { %v266_v47 = vpop.trf.xlu0 }
 0x176   :  { %914 = vmatprep.mubr.msk.f32.mxu1 %vm64_vm0, %v266_v47 }
 0x177   :  { %915 = vmatmul.mubr.msk.f32.gmra.mrb[6].mxu1 %vm64_vm0, %v298_v46 }
 0x17c   :  { %v362_v48 = vpop.trf.xlu1 }
 0x17d   :  { %v330_v49 = vpop.trf.xlu0 }
 0x17e   :  { %917 = vmatprep.mubr.msk.f32.mxu1 %vm64_vm0, %v330_v49 }
 0x17f   :  { %918 = vmatmul.mubr.msk.f32.gmra.mrb[8].mxu1 %vm64_vm0, %v362_v48 }
 0x184   :  { %v426_v50 = vpop.trf.xlu1 }
 0x185   :  { %v394_v51 = vpop.trf.xlu0 }
 0x186   :  { %920 = vmatprep.mubr.msk.f32.mxu1 %vm64_vm0, %v394_v51 }
 0x187   :  { %921 = vmatmul.mubr.msk.f32.gmra.mrb[10].mxu1 %vm64_vm0, %v426_v50 }
 0x242   :  { %v913_v52 = vpop.f32.mrb[4].mxu1 }
 0x243   :  { %v532_v53 = vpop.f32.mrb[5].mxu1  ;;  %603 = vxpose.xlu1.b32.start.end [1/1] (short) (narrow) %v913_v52, 8 }
 0x244   :  { %571 = vxpose.xlu0.b32.start.end [1/1] (short) (narrow) %v532_v53, 8 }
 0x24a   :  { %v916_v54 = vpop.f32.mrb[6].mxu1 }
 0x24b   :  { %v542_v55 = vpop.f32.mrb[7].mxu1  ;;  %667 = vxpose.xlu1.b32.start.end [1/1] (short) (narrow) %v916_v54, 8 }
 0x24c   :  { %635 = vxpose.xlu0.b32.start.end [1/1] (short) (narrow) %v542_v55, 8 }
 0x252   :  { %v919_v56 = vpop.f32.mrb[8].mxu1 }
 0x253   :  { %v552_v57 = vpop.f32.mrb[9].mxu1  ;;  %731 = vxpose.xlu1.b32.start.end [1/1] (short) (narrow) %v919_v56, 8 }
 0x254   :  { %699 = vxpose.xlu0.b32.start.end [1/1] (short) (narrow) %v552_v57, 8 }
 0x25a   :  { %v922_v58 = vpop.f32.mrb[10].mxu1 }
 0x25b   :  { %795 = vxpose.xlu1.b32.start.end [1/1] (short) (narrow) %v922_v58, 8  ;;  %v562_v59 = vpop.f32.mrb[11].mxu1 }
 0x25c   :  { %763 = vxpose.xlu0.b32.start.end [1/1] (short) (narrow) %v562_v59, 8 }
 0x2c3   :  { %v619_v60 = vpop.trf.xlu1 }
 0x2c4   :  { %829 = vst.msk [vmem:[#allocation5 + $0x8] sm:$0xff] %vm827_vm1, %v619_v60  ;;  %v587_v61 = vpop.trf.xlu0 }
 0x2c5   :  { %828 = vst.msk [vmem:[#allocation5] sm:$0xff] %vm827_vm1, %v587_v61 }
 0x2cb   :  { %v683_v62 = vpop.trf.xlu1 }
 0x2cc   :  { %831 = vst.msk [vmem:[#allocation5 + $0x18] sm:$0xff] %vm827_vm1, %v683_v62  ;;  %v651_v63 = vpop.trf.xlu0 }
 0x2cd   :  { %830 = vst.msk [vmem:[#allocation5 + $0x10] sm:$0xff] %vm827_vm1, %v651_v63 }
 0x2d3   :  { %v747_v0 = vpop.trf.xlu1 }
 0x2d4   :  { %833 = vst.msk [vmem:[#allocation5 + $0x28] sm:$0xff] %vm827_vm1, %v747_v0  ;;  %v715_v1 = vpop.trf.xlu0 }
 0x2d5   :  { %832 = vst.msk [vmem:[#allocation5 + $0x20] sm:$0xff] %vm827_vm1, %v715_v1 }
 0x2db   :  { %v811_v2 = vpop.trf.xlu1 }
 0x2dc   :  { %835 = vst.msk [vmem:[#allocation5 + $0x38] sm:$0xff] %vm827_vm1, %v811_v2  ;;  %v779_v3 = vpop.trf.xlu0 }
 0x2dd   :  { %834 = vst.msk [vmem:[#allocation5 + $0x30] sm:$0xff] %vm827_vm1, %v779_v3 }
 0x2de   :  { %968 = shalt.err (!%p965_p12)
}
 0x2df   :  { %s969_s7 = scalar_lea.hbm %s1073_s3, 1024 }
 0x2e0   :  { %p970_p13 = scmp.ne.s32.totalorder %s1073_s3, %s969_s7  ;;  %p973_p0 = scmp.lt.u32.totalorder %s969_s7, %s1073_s3 }
 0x2e2   :  { %p975_p1 = pnand %p973_p0, %p970_p13 }
 0x2e4   :  { %978 = shalt.err (!%p975_p1)
}
 0x2e5   :  { %847 = dma.vmem_to_hbm [thread:$0]  %s842_s30, 1024, %s1073_s3, [#allocation4], %s984_s22, %s984_s22, %s985_s23  }
 0x2e6   :  { %981 = dma.done.wait [#allocation4], 1024  }
 0x2e7   :  { %982 = vsyncadd [#allocation4], 4294966272 }
 0x2e8   :  { %851 = vsyncpa [#allocation3], 1 }
 0x2e9   :  { %852 = vsyncpa [#allocation4], 1 }

</bundles_post_ra>
